<compile_context>
chip_gen: v5e
topology: v5e:2x2
jax: 0.10.0
libtpu: 0.0.40
codegen_flags: <defaults>
</compile_context>

<pallas_src>
import jax
import jax.numpy as jnp
from jax.experimental import pallas as pl
from jax.experimental.pallas import tpu as pltpu

CIFAR_MEAN = (0.4914, 0.4822, 0.4465)
CIFAR_STD = (0.2471, 0.2435, 0.2616)

NUM_CLASSES = 10
STEM_CH = 16          # WRN-28-10 stem conv1 output channels
F_PAD = 128           # stem channels zero-padded to a full lane width
CLS_PAD = 128         # classes zero-padded to a full lane width


# --------------------------------------------------------------------------
# Fused kernel: [conv3x3 as im2col matmul + bias + ReLU] -> GAP -> FC head.
# One grid step == one batch sample (full H*W rows, lane-dense 128-wide tiles).
# --------------------------------------------------------------------------
def _fused_stem_kernel(p_ref, w_ref, b_ref, wfc_ref, bfc_ref, o_ref):
    # p_ref:   (1, HW, K)        bf16 im2col patches of (x - mean)
    # w_ref:   (K, F_PAD)        bf16 conv weights pre-scaled by 1/std[c]
    # b_ref:   (1, F_PAD)        f32 conv bias (zero in padded columns)
    # wfc_ref: (F_PAD, CLS_PAD)  f32 FC weights (zero in padded rows/cols)
    # bfc_ref: (1, CLS_PAD)      f32 FC bias (zero in padded columns)
    # o_ref:   (1, 1, CLS_PAD)   f32 logits (lane-dense store)
    hw = p_ref.shape[1]
    conv = jnp.dot(p_ref[0], w_ref[...],
                   preferred_element_type=jnp.float32)             # (HW, F_PAD)
    feat = jnp.maximum(conv + b_ref[...], 0.0)                      # ReLU, f32
    pooled = jnp.sum(feat, axis=0, keepdims=True) * (1.0 / hw)      # (1, F_PAD)
    logits = jnp.dot(pooled, wfc_ref[...],
                     preferred_element_type=jnp.float32) + bfc_ref[...]
    o_ref[0] = logits


# --------------------------------------------------------------------------
# Full forward (== Certify_Model.forward, cifar10 / 'cifar-wrn' branch)
# --------------------------------------------------------------------------
def certify_model_forward(x, params):
    """x: (N, 3, H, W) f32 in [0, 1]; params from fold_and_pad_params."""
    N, C, H, W = x.shape
    HW, K = H * W, C * 9
    mean = jnp.asarray(CIFAR_MEAN, jnp.float32).reshape(1, C, 1, 1)

    # Mean subtraction fuses into the pad/gather glue below; zero padding of
    # (x - mean) matches zero padding of the fully normalized tensor once the
    # 1/std factor has been folded into the conv weights.
    xz = x - mean
    xp = jnp.pad(xz, ((0, 0), (0, 0), (1, 1), (1, 1)))
    cols = [xp[:, :, dy:dy + H, dx:dx + W] for dy in range(3) for dx in range(3)]
    patches = (jnp.stack(cols, axis=2)          # (N, C, 9, H, W)
               .transpose(0, 3, 4, 1, 2)        # (N, H, W, C, 9)
               .reshape(N, HW, K)
               .astype(jnp.bfloat16))
    # TODO(synk): for the real WRN layers (C up to 640) build the im2col
    # in-kernel from a halo'd row block to avoid the 9x HBM inflation; it is
    # negligible for the 3-channel stem handled here.

    out = pl.pallas_call(
        _fused_stem_kernel,
        out_shape=jax.ShapeDtypeStruct((N, 1, CLS_PAD), jnp.float32),
        grid=(N,),
        in_specs=[
            pl.BlockSpec((1, HW, K), lambda n: (n, 0, 0)),
            pl.BlockSpec((K, F_PAD), lambda n: (0, 0)),
            pl.BlockSpec((1, F_PAD), lambda n: (0, 0)),
            pl.BlockSpec((F_PAD, CLS_PAD), lambda n: (0, 0)),
            pl.BlockSpec((1, CLS_PAD), lambda n: (0, 0)),
        ],
        out_specs=pl.BlockSpec((1, 1, CLS_PAD), lambda n: (n, 0, 0)),
        compiler_params=pltpu.CompilerParams(
            dimension_semantics=("parallel",)),   # megacore sharding on v7x
    )(patches, params["w_conv"], params["b_conv"],
      params["w_fc"], params["b_fc"])
    return out.reshape(N, CLS_PAD)[:, :NUM_CLASSES]


# --------------------------------------------------------------------------
# Parameters: raw (as the PyTorch model would hold them) + one-time prep that
# folds the normalization and pads channel/class dims to 128 lanes.
# --------------------------------------------------------------------------
def init_raw_params(key, *, in_ch=3, stem_ch=STEM_CH, num_classes=NUM_CLASSES):
    k1, k2, k3, k4 = jax.random.split(key, 4)
    return {
        # WRN-28-10 stem conv1 shape (16, 3, 3, 3) -> im2col layout (27, 16),
        # row order (c, ky, kx) with (ky, kx) fastest.
        "w_conv": 0.1 * jax.random.normal(k1, (in_ch * 9, stem_ch), jnp.float32),
        "b_conv": 0.1 * jax.random.normal(k2, (1, stem_ch), jnp.float32),
        "w_fc": 0.1 * jax.random.normal(k3, (stem_ch, num_classes), jnp.float32),
        "b_fc": 0.1 * jax.random.normal(k4, (1, num_classes), jnp.float32),
    }


def fold_and_pad_params(raw):
    """Fold 1/std[c] into the conv weights; zero-pad channel/class dims to 128."""
    w_conv, b_conv = raw["w_conv"], raw["b_conv"]
    w_fc, b_fc = raw["w_fc"], raw["b_fc"]
    k, f = w_conv.shape
    c = k // 9
    inv_std = 1.0 / jnp.asarray(CIFAR_STD, jnp.float32)[:c]
    w_scaled = (w_conv.reshape(c, 9, f) * inv_std[:, None, None]).reshape(k, f)
    return {
        "w_conv": jnp.pad(w_scaled, ((0, 0), (0, F_PAD - f))).astype(jnp.bfloat16),
        "b_conv": jnp.pad(b_conv, ((0, 0), (0, F_PAD - f))),
        "w_fc": jnp.pad(w_fc, ((0, F_PAD - f), (0, CLS_PAD - w_fc.shape[1]))),
        "b_fc": jnp.pad(b_fc, ((0, 0), (0, CLS_PAD - b_fc.shape[1]))),
    }


# --------------------------------------------------------------------------
# Pure-JAX f32 reference of the original semantics (normalize -> conv -> ReLU
# -> global-avg-pool -> FC) used only for a sanity check.
# --------------------------------------------------------------------------
def _reference_forward(x, raw):
    N, C, H, W = x.shape
    mean = jnp.asarray(CIFAR_MEAN, jnp.float32).reshape(1, C, 1, 1)
    std = jnp.asarray(CIFAR_STD, jnp.float32).reshape(1, C, 1, 1)
    xn = (x - mean) / std
    xp = jnp.pad(xn, ((0, 0), (0, 0), (1, 1), (1, 1)))
    cols = [xp[:, :, dy:dy + H, dx:dx + W] for dy in range(3) for dx in range(3)]
    patches = (jnp.stack(cols, axis=2).transpose(0, 3, 4, 1, 2)
               .reshape(N, H * W, C * 9))
    feat = jnp.maximum(
        jnp.einsum("nmk,kf->nmf", patches, raw["w_conv"]) + raw["b_conv"], 0.0)
    pooled = feat.mean(axis=1)
    return pooled @ raw["w_fc"] + raw["b_fc"]


if __name__ == "__main__":
    key = jax.random.PRNGKey(0)
    kx, kp = jax.random.split(key)
    # CIFAR-10-like input in [0, 1]: batch=2, 3 channels (means/stds are 3-ch),
    # spatial 32x32.
    x = jax.random.uniform(kx, (2, 3, 32, 32), dtype=jnp.float32)
    raw_params = init_raw_params(kp)
    params = fold_and_pad_params(raw_params)   # one-time prep, outside hot path

    logits = jax.jit(certify_model_forward)(x, params)
    logits = jax.block_until_ready(logits)
    assert logits.shape == (2, NUM_CLASSES) and logits.dtype == jnp.float32
    assert bool(jnp.all(jnp.isfinite(logits)))

    # Loose numerical check vs the f32 reference (bf16 MXU inputs -> small diffs).
    ref = _reference_forward(x, raw_params)
    max_err = float(jnp.max(jnp.abs(logits - ref)))
    assert max_err < 0.15, f"mismatch vs reference: {max_err}"
    print("KERNEL_OK")
</pallas_src>

<mosaic_0001>
module attributes {stable_mosaic.version = 11 : i64} {
  func.func @_fused_stem_kernel(%arg0: i32, %arg1: memref<1x1024x27xbf16, #tpu.memory_space<vmem>>, %arg2: memref<27x128xbf16, #tpu.memory_space<vmem>>, %arg3: memref<1x128xf32, #tpu.memory_space<vmem>>, %arg4: memref<128x128xf32, #tpu.memory_space<vmem>>, %arg5: memref<1x128xf32, #tpu.memory_space<vmem>>, %arg6: memref<1x1x128xf32, #tpu.memory_space<vmem>>) attributes {dimension_semantics = [#tpu.dimension_semantics<parallel>], iteration_bounds = array<i64: 2>, scalar_prefetch = 0 : i64, scratch_operands = 0 : i64, tpu.core_type = #tpu.core_type<tc>, window_params = [{transform_indices = @transform_0, window_bounds = array<i64: 1, 1024, 27>}, {pipeline_mode = #tpu.pipeline_mode<synchronous>, transform_indices = @transform_1, window_bounds = array<i64: 27, 128>}, {pipeline_mode = #tpu.pipeline_mode<synchronous>, transform_indices = @transform_2, window_bounds = array<i64: 1, 128>}, {pipeline_mode = #tpu.pipeline_mode<synchronous>, transform_indices = @transform_3, window_bounds = array<i64: 128, 128>}, {pipeline_mode = #tpu.pipeline_mode<synchronous>, transform_indices = @transform_4, window_bounds = array<i64: 1, 128>}, {transform_indices = @transform_5, window_bounds = array<i64: 1, 1, 128>}]} {
    %c0 = arith.constant 0 : index
    %c0_0 = arith.constant 0 : index
    %c0_1 = arith.constant 0 : index
    %0 = vector.load %arg1[%c0, %c0_0, %c0_1] : memref<1x1024x27xbf16, #tpu.memory_space<vmem>>, vector<1x1024x27xbf16>
    %1 = vector.shape_cast %0 : vector<1x1024x27xbf16> to vector<1024x27xbf16>
    %c0_2 = arith.constant 0 : index
    %c0_3 = arith.constant 0 : index
    %2 = vector.load %arg2[%c0_2, %c0_3] : memref<27x128xbf16, #tpu.memory_space<vmem>>, vector<27x128xbf16>
    %cst = arith.constant dense<0.000000e+00> : vector<1024x128xf32>
    %3 = tpu.matmul %1, %2, %cst {dimension_numbers = #tpu.dot_dimension_numbers<[1], [0], [0], [1], [0, 0, 1, 1], [], []>} : vector<1024x27xbf16>, vector<27x128xbf16>, vector<1024x128xf32> -> vector<1024x128xf32>
    %c0_4 = arith.constant 0 : index
    %c0_5 = arith.constant 0 : index
    %4 = vector.load %arg3[%c0_4, %c0_5] : memref<1x128xf32, #tpu.memory_space<vmem>>, vector<1x128xf32>
    %5 = vector.broadcast %4 : vector<1x128xf32> to vector<1024x128xf32>
    %6 = arith.addf %3, %5 : vector<1024x128xf32>
    %cst_6 = arith.constant 0.000000e+00 : f32
    %7 = vector.broadcast %cst_6 : f32 to vector<1024x128xf32>
    %8 = arith.maximumf %6, %7 : vector<1024x128xf32>
    %cst_7 = arith.constant dense<0.000000e+00> : vector<128xf32>
    %9 = vector.multi_reduction <add>, %8, %cst_7 [0] : vector<1024x128xf32> to vector<128xf32>
    %10 = vector.shape_cast %9 : vector<128xf32> to vector<1x128xf32>
    %cst_8 = arith.constant 9.765625E-4 : f32
    %11 = vector.broadcast %cst_8 : f32 to vector<1x128xf32>
    %12 = arith.mulf %10, %11 : vector<1x128xf32>
    %c0_9 = arith.constant 0 : index
    %c0_10 = arith.constant 0 : index
    %13 = vector.load %arg4[%c0_9, %c0_10] : memref<128x128xf32, #tpu.memory_space<vmem>>, vector<128x128xf32>
    %cst_11 = arith.constant dense<0.000000e+00> : vector<1x128xf32>
    %14 = tpu.matmul %12, %13, %cst_11 {dimension_numbers = #tpu.dot_dimension_numbers<[1], [0], [0], [1], [0, 0, 1, 1], [], []>} : vector<1x128xf32>, vector<128x128xf32>, vector<1x128xf32> -> vector<1x128xf32>
    %c0_12 = arith.constant 0 : index
    %c0_13 = arith.constant 0 : index
    %15 = vector.load %arg5[%c0_12, %c0_13] : memref<1x128xf32, #tpu.memory_space<vmem>>, vector<1x128xf32>
    %16 = arith.addf %14, %15 : vector<1x128xf32>
    %c0_14 = arith.constant 0 : index
    %c0_15 = arith.constant 0 : index
    %c0_16 = arith.constant 0 : index
    %17 = vector.load %arg6[%c0_14, %c0_15, %c0_16] : memref<1x1x128xf32, #tpu.memory_space<vmem>>, vector<1x1x128xf32>
    %18 = vector.shape_cast %17 : vector<1x1x128xf32> to vector<1x128xf32>
    %19 = vector.shape_cast %16 : vector<1x128xf32> to vector<1x1x128xf32>
    tpu.vector_store %arg6[%c0_14, %c0_15, %c0_16], %19 {strides = array<i32>} : memref<1x1x128xf32, #tpu.memory_space<vmem>>, vector<1x1x128xf32>,
    return
  }
  func.func @transform_0(%arg0: i32) -> (i32, i32, i32) {
    %c0_i32 = arith.constant 0 : i32
    %c0_i32_0 = arith.constant 0 : i32
    %c0_i32_1 = arith.constant 0 : i32
    return %arg0, %c0_i32, %c0_i32_0 : i32, i32, i32
  }
  func.func @transform_1(%arg0: i32) -> (i32, i32) {
    %c0_i32 = arith.constant 0 : i32
    %c0_i32_0 = arith.constant 0 : i32
    %c0_i32_1 = arith.constant 0 : i32
    return %c0_i32, %c0_i32_0 : i32, i32
  }
  func.func @transform_2(%arg0: i32) -> (i32, i32) {
    %c0_i32 = arith.constant 0 : i32
    %c0_i32_0 = arith.constant 0 : i32
    %c0_i32_1 = arith.constant 0 : i32
    return %c0_i32, %c0_i32_0 : i32, i32
  }
  func.func @transform_3(%arg0: i32) -> (i32, i32) {
    %c0_i32 = arith.constant 0 : i32
    %c0_i32_0 = arith.constant 0 : i32
    %c0_i32_1 = arith.constant 0 : i32
    return %c0_i32, %c0_i32_0 : i32, i32
  }
  func.func @transform_4(%arg0: i32) -> (i32, i32) {
    %c0_i32 = arith.constant 0 : i32
    %c0_i32_0 = arith.constant 0 : i32
    %c0_i32_1 = arith.constant 0 : i32
    return %c0_i32, %c0_i32_0 : i32, i32
  }
  func.func @transform_5(%arg0: i32) -> (i32, i32, i32) {
    %c0_i32 = arith.constant 0 : i32
    %c0_i32_0 = arith.constant 0 : i32
    %c0_i32_1 = arith.constant 0 : i32
    return %arg0, %c0_i32, %c0_i32_0 : i32, i32, i32
  }
}

</mosaic_0001>

<bundles_post_ra>
// kernel: certify_model_forward.1
= control target key start
LH: loop header
LB: loop body
LE: loop exit
PB: predicated region body
PF: predicated region fallthrough
CT: control target
= control target key end

     0   :  { %10 = vsyncpa [#allocation3], 0  ;;  %s2792_s0 = inlined_call_operand.vmem [shape: bf16[2,1024,27], index: 0, kind: input, shape index: {}]   ;;  %s2793_s1 = inlined_call_operand.vmem [shape: bf16[27,128], index: 1, kind: input, shape index: {}]   ;;  %s2794_s2 = inlined_call_operand.vmem [shape: f32[1,128], index: 2, kind: input, shape index: {}]   ;;  %s2795_s3 = inlined_call_operand.vmem [shape: f32[128,128], index: 3, kind: input, shape index: {}]   ;;  %s2796_s4 = inlined_call_operand.vmem [shape: f32[1,128], index: 4, kind: input, shape index: {}]   ;;  %s2797_s5 = inlined_call_operand.hbm [shape: f32[2,1,128], index: 5, kind: output, shape index: {}]  }
   0x1   :  { %12 = vsyncpa [#allocation3 + $0x1], 0  ;;  %s2133_s18 = smov 0   ;;  %s2135_s19 = smov 0  }
   0x2   :  { %s2137_s20 = smov 0   ;;  %s2139_s21 = smov 0  }
   0x3 LB: > { %s2154_s22 = sadd.s32 4294967295, %s2100_s21   ;;  %s1587_s23 = sadd.s32 4294967294, %s2100_s21   ;;  %s2100_s21 = sphi %s2139_s21, %s2831_s21   ;;  %s2096_s20 = sphi %s2137_s20, %s2830_s20   ;;  %s2092_s19 = sphi %s2135_s19, %s2829_s19   ;;  %s2088_s18 = sphi %s2133_s18, %s2828_s18  }
   0x4   : > { %s2158_s24 = sadd.s32 1, %s2100_s21   ;;  %s135_s25 = sadd.s32 1, %s2096_s20 }
   0x5   : > { %s132_s26 = ssub.s32 %s2100_s21, %s2158_s24  ;;  %p145_p0 = scmp.ne.s32.totalorder %s2096_s20, %s2092_s19 }
   0x6   : > { %p133_p1 = scmp.eq.s32.totalorder %s132_s26, 0  ;;  %p146_p2 = scmp.eq.s32.totalorder %s2154_s22, 1 }
   0x7   : > { %p151_p3 = scmp.ne.s32.totalorder %s2092_s19, %s2088_s18  ;;  %p152_p4 = scmp.eq.s32.totalorder %s1587_s23, 1 }
   0x8   : > { %s2169_s27 = scalar_select %p133_p1, %s2096_s20, %s135_s25  }
   0x9   : > { %p2171_p5 = por %p146_p2, %p145_p0  ;;  %p2175_p6 = por %p152_p4, %p151_p3 }
   0xa   : > { %p1590_p7 = scmp.ge.s32.totalorder %s2100_s21, 1  ;;  %p190_p8 = scmp.lt.s32.totalorder %s2100_s21, 3 }
   0xc   : > { %p191_p9 = pnand %p1590_p7, %p190_p8 }
   0xe   : > { %194 = sbr.rel (%p191_p9) target bundleno = 761 (0x2f9), region = 40 }
  0x13   : > { %v1855_v0 = vld [vmem:[%s2793_s1 + $0x8] sm:$0xf]  ;;  %v1989_v1 = vld [vmem:[%s2793_s1 + $0x8] sm:$0x30]  ;;  %vm883_vm0 = vcmask 1044480   ;;  %vm884_vm1 = vcmask 1045504   ;;  %s1528_s7 = scalar_lea.hbm %s2797_s5, %s2154_s22 }
  0x14   : > { %v1856_v2 = vor.u32 %v1989_v1, %v1855_v0  ;;  %p217_p10 = scmp.lt.s32.totalorder %s2154_s22, 1  ;;  %v2102_v3 = vmov 65535   ;;  %v1988_v7 = vld [vmem:[%s2793_s1] sm:$0xff]  ;;  %vm690_vm2 = vcmask 220160   ;;  %s215_s26 = sand.u32 1, %s2092_s19  }
  0x15   : > { %v885_v4 = vsel %vm883_vm0, 4294967295, %v2102_v3  ;;  %v2233_v26 = vld [vmem:[%s2794_s2] ss:$0 sm:$0xff]  ;;  %s1532_s12 = sshll.u32 %s1528_s7, 4  ;;  %s1520_s13 = scalar_lea.sflag [#allocation3], %s215_s26  ;;  %s1533_s12 = int_to_ptr.hbm [resolvable:$true] %s1532_s12 }
  0x16   : > { %v886_v5 = vsel %vm884_vm1, %v885_v4, 0  ;;  %s218_s9 = scalar_select %p217_p10, %s2154_s22, 1 }
  0x17   : > { %v888_v6 = vand.u32 %v1856_v2, %v886_v5  ;;  %s2052_s14 = sshra.s32 %s1533_s12, 4  ;;  %s2058_s17 = scalar_lea.hbm %s2797_s5, 2  ;;  %s2053_s14 = int_to_ptr.hbm [resolvable:$true] %s2052_s14 }
  0x18   : > { %s1923_s10 = sshll.u32 %s218_s9, 9  ;;  %p2059_p0 = scmp.lt.s32.totalorder %s2053_s14, %s2797_s5 }
  0x19   : > { %896 = vmatpush.bf16.msra.mxu0 %v888_v6  ;;  %s2195_s15 = scalar_lea.vmem %s2792_s0, %s1923_s10  ;;  %1991 = vmatpush.bf16.msra.mxu2 %v888_v6  ;;  %s216_s10 = scalar_lea.vmem [#allocation2], %s215_s26 }
  0x1a   : > { %1990 = vmatpush.bf16.msra.mxu1 %v888_v6  ;;  %1992 = vmatpush.bf16.msra.mxu3 %v888_v6  ;;  %v1924_v8 = vld [vmem:[%s2195_s15] sm:$0xff]  ;;  %v1925_v9 = vld [vmem:[%s2195_s15 + $0x8] sm:$0xff]  ;;  %v1926_v10 = vld [vmem:[%s2195_s15 + $0x10] sm:$0xff]  ;;  %s1530_s11 = sshll.u32 %s216_s10, 4  ;;  %s1531_s11 = int_to_ptr.vmem [resolvable:$true] %s1530_s11 }
  0x1b   : > { %v1927_v11 = vld [vmem:[%s2195_s15 + $0x18] sm:$0xff]  ;;  %v1928_v12 = vld [vmem:[%s2195_s15 + $0x20] sm:$0xff]  ;;  %v1954_v13 = vld [vmem:[%s2195_s15 + $0xf0] sm:$0xff] }
  0x1c   : > { %v1941_v14 = vld [vmem:[%s2195_s15 + $0x88] sm:$0xff]  ;;  %v1955_v16 = vld [vmem:[%s2195_s15 + $0xf8] sm:$0xff]  ;;  %v1942_v17 = vld [vmem:[%s2195_s15 + $0x90] sm:$0xff] }
  0x1d   : > { %897 = vmatpush.bf16.msra.mxu0 %v1988_v7  ;;  %1994 = vmatpush.bf16.msra.mxu2 %v1988_v7  ;;  %v1929_v15 = vld [vmem:[%s2195_s15 + $0x28] sm:$0xff]  ;;  %v1930_v18 = vld [vmem:[%s2195_s15 + $0x30] sm:$0xff]  ;;  %v1956_v19 = vld [vmem:[%s2195_s15 + $0x100] sm:$0xff] }
  0x1e   : > { %1993 = vmatpush.bf16.msra.mxu1 %v1988_v7  ;;  %1995 = vmatpush.bf16.msra.mxu3 %v1988_v7  ;;  %v1943_v20 = vld [vmem:[%s2195_s15 + $0x98] sm:$0xff]  ;;  %v1957_v22 = vld [vmem:[%s2195_s15 + $0x108] sm:$0xff]  ;;  %v1944_v23 = vld [vmem:[%s2195_s15 + $0xa0] sm:$0xff] }
  0x1f   : > { %v1931_v21 = vld [vmem:[%s2195_s15 + $0x38] sm:$0xff]  ;;  %v1932_v24 = vld [vmem:[%s2195_s15 + $0x40] sm:$0xff]  ;;  %v1958_v32 = vld [vmem:[%s2195_s15 + $0x110] sm:$0xff] }
  0x20   : > { %1857 = vmatmul.msk.bf16.vlgmr.msra.gmra.mxu0 %vm690_vm2, %v1924_v8  ;;  %1887 = vmatmul.msk.bf16.vlgmr.msra.gmra.mxu2 %vm690_vm2, %v1954_v13  ;;  %v1945_v34 = vld [vmem:[%s2195_s15 + $0xa8] sm:$0xff]  ;;  %v1971_v36 = vld [vmem:[%s2195_s15 + $0x178] sm:$0xff]  ;;  %v1946_v46 = vld [vmem:[%s2195_s15 + $0xb0] sm:$0xff] }
  0x21   : > { %1874 = vmatmul.msk.bf16.vlgmr.msra.gmra.mxu1 %vm690_vm2, %v1941_v14  ;;  %v1933_v35 = vld [vmem:[%s2195_s15 + $0x48] sm:$0xff]  ;;  %1904 = vmatmul.msk.bf16.vlgmr.msra.gmra.mxu3 %vm690_vm2, %v1971_v36  ;;  %v1959_v44 = vld [vmem:[%s2195_s15 + $0x118] sm:$0xff]  ;;  %v1934_v47 = vld [vmem:[%s2195_s15 + $0x50] sm:$0xff] }
  0x22   : > { %v1972_v48 = vld [vmem:[%s2195_s15 + $0x180] sm:$0xff]  ;;  %v1947_v58 = vld [vmem:[%s2195_s15 + $0xb8] sm:$0xff]  ;;  %v1973_v60 = vld [vmem:[%s2195_s15 + $0x188] sm:$0xff] }
  0x23   : > { %v1960_v56 = vld [vmem:[%s2195_s15 + $0x120] sm:$0xff]  ;;  %v1935_v59 = vld [vmem:[%s2195_s15 + $0x58] sm:$0xff]  ;;  %v1961_v4 = vld [vmem:[%s2195_s15 + $0x128] sm:$0xff] }
  0x24   : > { %v1948_v6 = vld [vmem:[%s2195_s15 + $0xc0] sm:$0xff]  ;;  %v1974_v8 = vld [vmem:[%s2195_s15 + $0x190] sm:$0xff] }
  0x25   : > { %v1936_v7 = vld [vmem:[%s2195_s15 + $0x60] sm:$0xff]  ;;  %v1950_v36 = vld [vmem:[%s2195_s15 + $0xd0] sm:$0xff] }
  0x30   : > { %1858 = vmatmul.msk.bf16.gmra.mxu0 %vm690_vm2, %v1925_v9  ;;  %1888 = vmatmul.msk.bf16.gmra.mxu2 %vm690_vm2, %v1955_v16  ;;  %v1962_v16 = vld [vmem:[%s2195_s15 + $0x130] sm:$0xff] }
  0x31   : > { %1875 = vmatmul.msk.bf16.gmra.mxu1 %vm690_vm2, %v1942_v17  ;;  %1905 = vmatmul.msk.bf16.gmra.mxu3 %vm690_vm2, %v1972_v48 }
  0x40   : > { %1859 = vmatmul.msk.bf16.gmra.mxu0 %vm690_vm2, %v1926_v10  ;;  %1889 = vmatmul.msk.bf16.gmra.mxu2 %vm690_vm2, %v1956_v19  ;;  %v1949_v19 = vld [vmem:[%s2195_s15 + $0xc8] sm:$0xff] }
  0x41   : > { %1876 = vmatmul.msk.bf16.gmra.mxu1 %vm690_vm2, %v1943_v20  ;;  %1906 = vmatmul.msk.bf16.gmra.mxu3 %vm690_vm2, %v1973_v60  ;;  %v1937_v20 = vld [vmem:[%s2195_s15 + $0x68] sm:$0xff] }
  0x50   : > { %1860 = vmatmul.msk.bf16.gmra.mxu0 %vm690_vm2, %v1927_v11  ;;  %1890 = vmatmul.msk.bf16.gmra.mxu2 %vm690_vm2, %v1957_v22 }
  0x51   : > { %1877 = vmatmul.msk.bf16.gmra.mxu1 %vm690_vm2, %v1944_v23  ;;  %1907 = vmatmul.msk.bf16.gmra.mxu3 %vm690_vm2, %v1974_v8 }
  0x60   : > { %1861 = vmatmul.msk.bf16.gmra.mxu0 %vm690_vm2, %v1928_v12  ;;  %1891 = vmatmul.msk.bf16.gmra.mxu2 %vm690_vm2, %v1958_v32 }
  0x61   : > { %1878 = vmatmul.msk.bf16.gmra.mxu1 %vm690_vm2, %v1945_v34 }
  0x70   : > { %1862 = vmatmul.msk.bf16.gmra.mxu0 %vm690_vm2, %v1929_v15  ;;  %1892 = vmatmul.msk.bf16.gmra.mxu2 %vm690_vm2, %v1959_v44 }
  0x71   : > { %1879 = vmatmul.msk.bf16.gmra.mxu1 %vm690_vm2, %v1946_v46 }
  0x80   : > { %1863 = vmatmul.msk.bf16.gmra.mxu0 %vm690_vm2, %v1930_v18  ;;  %1893 = vmatmul.msk.bf16.gmra.mxu2 %vm690_vm2, %v1960_v56 }
  0x81   : > { %1880 = vmatmul.msk.bf16.gmra.mxu1 %vm690_vm2, %v1947_v58 }
  0x90   : > { %1864 = vmatmul.msk.bf16.gmra.mxu0 %vm690_vm2, %v1931_v21  ;;  %1894 = vmatmul.msk.bf16.gmra.mxu2 %vm690_vm2, %v1961_v4  ;;  %v1975_v21 = vld [vmem:[%s2195_s15 + $0x198] sm:$0xff]  ;;  %v1952_v4 = vld [vmem:[%s2195_s15 + $0xe0] sm:$0xff] }
  0x91   : > { %1881 = vmatmul.msk.bf16.gmra.mxu1 %vm690_vm2, %v1948_v6  ;;  %1908 = vmatmul.msk.bf16.gmra.mxu3 %vm690_vm2, %v1975_v21  ;;  %v1978_v6 = vld [vmem:[%s2195_s15 + $0x1b0] sm:$0xff]  ;;  %v1953_v21 = vld [vmem:[%s2195_s15 + $0xe8] sm:$0xff] }
  0x9d   : > { %v899_v25 = vpop.f32.mrf.mxu0 }
  0x9e   : > { %v900_v27 = vadd.f32 %v2233_v26, %v899_v25  ;;  %v2279_v17 = vpop.f32.mrf.mxu1 }
  0xa0   : > { %1865 = vmatmul.msk.bf16.gmra.mxu0 %vm690_vm2, %v1932_v24  ;;  %v1219_v30 = vmax.f32 %v900_v27, 0.0  ;;  %1895 = vmatmul.msk.bf16.gmra.mxu2 %vm690_vm2, %v1962_v16 }
  0xa1   : > { %1882 = vmatmul.msk.bf16.gmra.mxu1 %vm690_vm2, %v1949_v19 }
  0xa3   : > { %v2286_v23 = vpop.f32.mrf.mxu2 }
  0xa5   : > { %v901_v28 = vpop.f32.mrf.mxu0 }
  0xa6   : > { %v902_v29 = vadd.f32 %v2233_v26, %v901_v28  ;;  %v2291_v27 = vpop.f32.mrf.mxu1 }
  0xa8   : > { %v1220_v31 = vmax.f32 %v902_v29, 0.0 }
  0xaa   : > { %v1347_v33 = vadd.f32 %v1220_v31, %v1219_v30 }
  0xab   : > { %v2293_v30 = vpop.f32.mrf.mxu2 }
  0xad   : > { %v904_v37 = vpop.f32.mrf.mxu0 }
  0xae   : > { %v905_v38 = vadd.f32 %v2233_v26, %v904_v37  ;;  %v2297_v34 = vpop.f32.mrf.mxu1  ;;  %v1938_v37 = vld [vmem:[%s2195_s15 + $0x70] sm:$0xff] }
  0xb0   : > { %v1221_v39 = vmax.f32 %v905_v38, 0.0  ;;  %1866 = vmatmul.msk.bf16.gmra.mxu0 %vm690_vm2, %v1933_v35  ;;  %v1976_v38 = vld [vmem:[%s2195_s15 + $0x1a0] sm:$0xff] }
  0xb1   : > { %1883 = vmatmul.msk.bf16.gmra.mxu1 %vm690_vm2, %v1950_v36  ;;  %1909 = vmatmul.msk.bf16.gmra.mxu3 %vm690_vm2, %v1976_v38 }
  0xb2   : > { %v1348_v40 = vadd.f32 %v1347_v33, %v1221_v39  ;;  %v1963_v33 = vld [vmem:[%s2195_s15 + $0x138] sm:$0xff] }
  0xb3   : > { %1896 = vmatmul.msk.bf16.gmra.mxu2 %vm690_vm2, %v1963_v33 }
  0xb5   : > { %v906_v41 = vpop.f32.mrf.mxu0 }
  0xb6   : > { %v907_v42 = vadd.f32 %v2233_v26, %v906_v41 }
  0xb8   : > { %v1222_v43 = vmax.f32 %v907_v42, 0.0 }
  0xba   : > { %v1349_v45 = vadd.f32 %v1348_v40, %v1222_v43  ;;  %v2304_v40 = vpop.f32.mrf.mxu2  ;;  %v2309_v43 = vpop.f32.mrf.mxu1 }
  0xbd   : > { %v909_v49 = vpop.f32.mrf.mxu0 }
  0xbe   : > { %v910_v50 = vadd.f32 %v2233_v26, %v909_v49  ;;  %v1964_v49 = vld [vmem:[%s2195_s15 + $0x140] sm:$0xff] }
  0xc0   : > { %v1223_v51 = vmax.f32 %v910_v50, 0.0  ;;  %1867 = vmatmul.msk.bf16.gmra.mxu0 %vm690_vm2, %v1934_v47 }
  0xc2   : > { %v1350_v52 = vadd.f32 %v1349_v45, %v1223_v51  ;;  %v2311_v46 = vpop.f32.mrf.mxu2  ;;  %v2315_v50 = vpop.f32.mrf.mxu1 }
  0xc3   : > { %1897 = vmatmul.msk.bf16.gmra.mxu2 %vm690_vm2, %v1964_v49 }
  0xc5   : > { %v911_v53 = vpop.f32.mrf.mxu0 }
  0xc6   : > { %v912_v54 = vadd.f32 %v2233_v26, %v911_v53  ;;  %v1939_v53 = vld [vmem:[%s2195_s15 + $0x78] sm:$0xff] }
  0xc8   : > { %v1224_v55 = vmax.f32 %v912_v54, 0.0  ;;  %v1977_v54 = vld [vmem:[%s2195_s15 + $0x1a8] sm:$0xff] }
  0xc9   : > { %1910 = vmatmul.msk.bf16.gmra.mxu3 %vm690_vm2, %v1977_v54 }
  0xca   : > { %v1351_v57 = vadd.f32 %v1350_v52, %v1224_v55  ;;  %v1951_v52 = vld [vmem:[%s2195_s15 + $0xd8] sm:$0xff]  ;;  %v2322_v56 = vpop.f32.mrf.mxu2 }
  0xcb   : > { %1884 = vmatmul.msk.bf16.gmra.mxu1 %vm690_vm2, %v1951_v52 }
  0xcd   : > { %v914_v61 = vpop.f32.mrf.mxu0 }
  0xce   : > { %v915_v62 = vadd.f32 %v2233_v26, %v914_v61 }
  0xd0   : > { %v1225_v63 = vmax.f32 %v915_v62, 0.0  ;;  %1868 = vmatmul.msk.bf16.gmra.mxu0 %vm690_vm2, %v1935_v59  ;;  %v2327_v59 = vpop.f32.mrf.mxu1 }
  0xd2   : > { %v1352_v0 = vadd.f32 %v1351_v57, %v1225_v63  ;;  %v2329_v62 = vpop.f32.mrf.mxu2 }
  0xd5   : > { %v916_v1 = vpop.f32.mrf.mxu0 }
  0xd6   : > { %v917_v2 = vadd.f32 %v2233_v26, %v916_v1  ;;  %v1965_v1 = vld [vmem:[%s2195_s15 + $0x148] sm:$0xff] }
  0xd7   : > { %1898 = vmatmul.msk.bf16.gmra.mxu2 %vm690_vm2, %v1965_v1  ;;  %v1981_v1 = vld [vmem:[%s2195_s15 + $0x1c8] sm:$0xff] }
  0xd8   : > { %v1226_v3 = vmax.f32 %v917_v2, 0.0  ;;  %v2333_v2 = vpop.f32.mrf.mxu1 }
  0xd9   : > { %1911 = vmatmul.msk.bf16.gmra.mxu3 %vm690_vm2, %v1978_v6 }
  0xda   : > { %v1353_v5 = vadd.f32 %v1352_v0, %v1226_v3  ;;  %v2340_v8 = vpop.f32.mrf.mxu2 }
  0xdb   : > { %1885 = vmatmul.msk.bf16.gmra.mxu1 %vm690_vm2, %v1952_v4 }
  0xdd   : > { %v919_v9 = vpop.f32.mrf.mxu0 }
  0xde   : > { %v920_v10 = vadd.f32 %v2233_v26, %v919_v9 }
  0xe0   : > { %v1227_v11 = vmax.f32 %v920_v10, 0.0  ;;  %1869 = vmatmul.msk.bf16.gmra.mxu0 %vm690_vm2, %v1936_v7 }
  0xe2   : > { %v1354_v12 = vadd.f32 %v1353_v5, %v1227_v11  ;;  %v1940_v5 = vld [vmem:[%s2195_s15 + $0x80] sm:$0xff]  ;;  %v2345_v11 = vpop.f32.mrf.mxu1 }
  0xe5   : > { %v921_v13 = vpop.f32.mrf.mxu0 }
  0xe6   : > { %v922_v14 = vadd.f32 %v2233_v26, %v921_v13 }
  0xe8   : > { %v1228_v15 = vmax.f32 %v922_v14, 0.0  ;;  %v2347_v14 = vpop.f32.mrf.mxu2 }
  0xea   : > { %v1355_v18 = vadd.f32 %v1354_v12, %v1228_v15 }
  0xeb   : > { %1886 = vmatmul.msk.bf16.gmra.mxu1 %vm690_vm2, %v1953_v21 }
  0xed   : > { %v924_v22 = vpop.f32.mrf.mxu0 }
  0xee   : > { %v925_v24 = vadd.f32 %v2233_v26, %v924_v22  ;;  %v1979_v22 = vld [vmem:[%s2195_s15 + $0x1b8] sm:$0xff] }
  0xef   : > { %1912 = vmatmul.msk.bf16.gmra.mxu3 %vm690_vm2, %v1979_v22 }
  0xf0   : > { %v1229_v25 = vmax.f32 %v925_v24, 0.0  ;;  %1870 = vmatmul.msk.bf16.gmra.mxu0 %vm690_vm2, %v1937_v20  ;;  %v2351_v20 = vpop.f32.mrf.mxu1 }
  0xf2   : > { %v1356_v28 = vadd.f32 %v1355_v18, %v1229_v25  ;;  %v1966_v18 = vld [vmem:[%s2195_s15 + $0x150] sm:$0xff]  ;;  %v2357_v25 = vpop.f32.mrf.mxu2 }
  0xf3   : > { %1899 = vmatmul.msk.bf16.gmra.mxu2 %vm690_vm2, %v1966_v18 }
  0xf5   : > { %v926_v29 = vpop.f32.mrf.mxu0 }
  0xf6   : > { %v927_v31 = vadd.f32 %v2233_v26, %v926_v29 }
  0xf8   : > { %v1230_v32 = vmax.f32 %v927_v31, 0.0  ;;  %v2361_v31 = vpop.f32.mrf.mxu3  ;;  %v2363_v33 = vpop.f32.mrf.mxu1 }
  0xf9   : > { %2800 = vst [vmem:[#allocation5_spill] sm:$0xff] %v2361_v31 }
  0xfa   : > { %v1357_v35 = vadd.f32 %v1356_v28, %v1230_v32  ;;  %v2365_v36 = vpop.f32.mrf.mxu2 }
  0xfd   : > { %v929_v39 = vpop.f32.mrf.mxu0 }
  0xfe   : > { %v930_v41 = vadd.f32 %v2233_v26, %v929_v39  ;;  %v1967_v39 = vld [vmem:[%s2195_s15 + $0x158] sm:$0xff] }
 0x100   : > { %v1231_v42 = vmax.f32 %v930_v41, 0.0  ;;  %1871 = vmatmul.msk.bf16.gmra.mxu0 %vm690_vm2, %v1938_v37  ;;  %v2369_v41 = vpop.f32.mrf.mxu3  ;;  %v2376_v49 = vpop.f32.mrf.mxu1 }
 0x101   : > { %2801 = vst [vmem:[#allocation6_spill] sm:$0xff] %v2369_v41 }
 0x102   : > { %v1358_v44 = vadd.f32 %v1357_v35, %v1231_v42 }
 0x103   : > { %1900 = vmatmul.msk.bf16.gmra.mxu2 %vm690_vm2, %v1967_v39 }
 0x105   : > { %v931_v45 = vpop.f32.mrf.mxu0 }
 0x106   : > { %v932_v47 = vadd.f32 %v2233_v26, %v931_v45 }
 0x108   : > { %v1232_v48 = vmax.f32 %v932_v47, 0.0  ;;  %v2373_v47 = vpop.f32.mrf.mxu2  ;;  %v2379_v52 = vpop.f32.mrf.mxu3 }
 0x109   : > { %2802 = vst [vmem:[#allocation7_spill] sm:$0xff] %v2379_v52 }
 0x10a   : > { %v1359_v51 = vadd.f32 %v1358_v44, %v1232_v48  ;;  %v1980_v44 = vld [vmem:[%s2195_s15 + $0x1c0] sm:$0xff] }
 0x10b   : > { %1913 = vmatmul.msk.bf16.gmra.mxu3 %vm690_vm2, %v1980_v44 }
 0x10d   : > { %v934_v55 = vpop.f32.mrf.mxu0 }
 0x10e   : > { %v935_v57 = vadd.f32 %v2233_v26, %v934_v55 }
 0x110   : > { %v1233_v58 = vmax.f32 %v935_v57, 0.0  ;;  %1872 = vmatmul.msk.bf16.gmra.mxu0 %vm690_vm2, %v1939_v53  ;;  %v2381_v55 = vpop.f32.mrf.mxu2 }
 0x112   : > { %v1360_v60 = vadd.f32 %v1359_v51, %v1233_v58 }
 0x115   : > { %v936_v61 = vpop.f32.mrf.mxu0 }
 0x116   : > { %v937_v63 = vadd.f32 %v2233_v26, %v936_v61  ;;  %v1968_v61 = vld [vmem:[%s2195_s15 + $0x160] sm:$0xff] }
 0x117   : > { %1901 = vmatmul.msk.bf16.gmra.mxu2 %vm690_vm2, %v1968_v61 }
 0x118   : > { %v1234_v0 = vmax.f32 %v937_v63, 0.0  ;;  %v2387_v63 = vpop.f32.mrf.mxu3  ;;  %v2391_v4 = vpop.f32.mrf.mxu2 }
 0x119   : > { %2803 = vst [vmem:[#allocation8_spill] sm:$0xff] %v2387_v63 }
 0x11a   : > { %v1361_v3 = vadd.f32 %v1360_v60, %v1234_v0  ;;  %v2384_v60 = vpop.f32.mrf.mxu1 }
 0x11b   : > { %1914 = vmatmul.msk.bf16.gmra.mxu3 %vm690_vm2, %v1981_v1 }
 0x11d   : > { %v939_v7 = vpop.f32.mrf.mxu0 }
 0x11e   : > { %v940_v9 = vadd.f32 %v2233_v26, %v939_v7 }
 0x120   : > { %v1235_v10 = vmax.f32 %v940_v9, 0.0  ;;  %1873 = vmatmul.msk.bf16.gmra.mxu0 %vm690_vm2, %v1940_v5  ;;  %v2395_v7 = vpop.f32.mrf.mxu3 }
 0x121   : > { %2804 = vst [vmem:[#allocation9_spill] sm:$0xff] %v2395_v7 }
 0x122   : > { %v1362_v12 = vadd.f32 %v1361_v3, %v1235_v10  ;;  %v2397_v10 = vpop.f32.mrf.mxu1 }
 0x125   : > { %v941_v13 = vpop.f32.mrf.mxu0 }
 0x126   : > { %v942_v15 = vadd.f32 %v2233_v26, %v941_v13  ;;  %v2399_v13 = vpop.f32.mrf.mxu2 }
 0x128   : > { %v1236_v16 = vmax.f32 %v942_v15, 0.0  ;;  %v1969_v15 = vld [vmem:[%s2195_s15 + $0x168] sm:$0xff] }
 0x129   : > { %1902 = vmatmul.msk.bf16.gmra.mxu2 %vm690_vm2, %v1969_v15 }
 0x12a   : > { %v1363_v19 = vadd.f32 %v1362_v12, %v1236_v16  ;;  %v2402_v16 = vpop.f32.mrf.mxu3  ;;  %v2405_v18 = vpop.f32.mrf.mxu1 }
 0x12b   : > { %2805 = vst [vmem:[#allocation10_spill] sm:$0xff] %v2402_v16 }
 0x12d   : > { %v944_v24 = vpop.f32.mrf.mxu0 }
 0x12e   : > { %v945_v28 = vadd.f32 %v2233_v26, %v944_v24  ;;  %v2408_v22 = vpop.f32.mrf.mxu2 }
 0x130   : > { %v1237_v29 = vmax.f32 %v945_v28, 0.0 }
 0x132   : > { %v1364_v32 = vadd.f32 %v1363_v19, %v1237_v29  ;;  %v1982_v19 = vld [vmem:[%s2195_s15 + $0x1d0] sm:$0xff]  ;;  %v2411_v24 = vpop.f32.mrf.mxu3 }
 0x133   : > { %1915 = vmatmul.msk.bf16.gmra.mxu3 %vm690_vm2, %v1982_v19  ;;  %2806 = vst [vmem:[#allocation11_spill] sm:$0xff] %v2411_v24 }
 0x135   : > { %v946_v35 = vpop.f32.mrf.mxu0 }
 0x136   : > { %v947_v37 = vadd.f32 %v2233_v26, %v946_v35  ;;  %v2413_v29 = vpop.f32.mrf.mxu2  ;;  %v1970_v35 = vld [vmem:[%s2195_s15 + $0x170] sm:$0xff] }
 0x138   : > { %v1238_v38 = vmax.f32 %v947_v37, 0.0 }
 0x139   : > { %1903 = vmatmul.msk.bf16.gmra.mxu2 %vm690_vm2, %v1970_v35 }
 0x13a   : > { %v1365_v42 = vadd.f32 %v1364_v32, %v1238_v38  ;;  %v2415_v32 = vpop.f32.mrf.mxu1  ;;  %v2418_v37 = vpop.f32.mrf.mxu3  ;;  %v1983_v38 = vld [vmem:[%s2195_s15 + $0x1d8] sm:$0xff] }
 0x13b   : > { %2807 = vst [vmem:[#allocation12_spill] sm:$0xff] %v2418_v37 }
 0x13d   : > { %v949_v45 = vpop.f32.mrf.mxu0 }
 0x13e   : > { %v950_v48 = vadd.f32 %v2233_v26, %v949_v45 }
 0x140   : > { %v1239_v51 = vmax.f32 %v950_v48, 0.0 }
 0x142   : > { %v1366_v53 = vadd.f32 %v1365_v42, %v1239_v51  ;;  %v2423_v42 = vpop.f32.mrf.mxu2  ;;  %v2425_v44 = vpop.f32.mrf.mxu1 }
 0x143   : > { %1916 = vmatmul.msk.bf16.gmra.mxu3 %vm690_vm2, %v1983_v38  ;;  %v2427_v45 = vpop.f32.mrf.mxu3 }
 0x144   : > { %2808 = vst [vmem:[#allocation13_spill] sm:$0xff] %v2427_v45 }
 0x145   : > { %v951_v54 = vpop.f32.mrf.mxu0 }
 0x146   : > { %v952_v57 = vadd.f32 %v2233_v26, %v951_v54 }
 0x148   : > { %v1240_v58 = vmax.f32 %v952_v57, 0.0  ;;  %v1984_v57 = vld [vmem:[%s2195_s15 + $0x1e0] sm:$0xff] }
 0x14a   : > { %v1367_v0 = vadd.f32 %v1366_v53, %v1240_v58  ;;  %v2429_v51 = vpop.f32.mrf.mxu2  ;;  %v2433_v54 = vpop.f32.mrf.mxu1 }
 0x14b   : > { %v2431_v53 = vpop.f32.mrf.mxu3 }
 0x14c   : > { %2809 = vst [vmem:[#allocation14_spill] sm:$0xff] %v2431_v53 }
 0x14d   : > { %v954_v3 = vpop.f32.mrf.mxu0 }
 0x14e   : > { %v955_v5 = vadd.f32 %v2233_v26, %v954_v3 }
 0x150   : > { %v1241_v6 = vmax.f32 %v955_v5, 0.0 }
 0x152   : > { %v1368_v9 = vadd.f32 %v1367_v0, %v1241_v6  ;;  %v2439_v0 = vpop.f32.mrf.mxu2  ;;  %v2441_v3 = vpop.f32.mrf.mxu1  ;;  %v1985_v6 = vld [vmem:[%s2195_s15 + $0x1e8] sm:$0xff] }
 0x153   : > { %1917 = vmatmul.msk.bf16.gmra.mxu3 %vm690_vm2, %v1984_v57  ;;  %v2437_v61 = vpop.f32.mrf.mxu3 }
 0x154   : > { %2810 = vst [vmem:[#allocation15_spill] sm:$0xff] %v2437_v61 }
 0x155   : > { %v956_v12 = vpop.f32.mrf.mxu0 }
 0x156   : > { %v957_v35 = vadd.f32 %v2233_v26, %v956_v12 }
 0x158   : > { %v1242_v53 = vmax.f32 %v957_v35, 0.0 }
 0x15a   : > { %v2446_v19 = vpop.f32.mrf.mxu2  ;;  %v2450_v38 = vpop.f32.mrf.mxu1  ;;  %v1369_v16 = vadd.f32 %v1368_v9, %v1242_v53 }
 0x15b   : > { %v2443_v5 = vpop.f32.mrf.mxu3 }
 0x15c   : > { %2811 = vst [vmem:[#allocation16_spill] sm:$0xff] %v2443_v5 }
 0x15d   : > { %v959_v21 = vpop.f32.mrf.mxu0 }
 0x15e   : > { %v960_v57 = vadd.f32 %v2233_v26, %v959_v21 }
 0x160   : > { %v1243_v37 = vmax.f32 %v960_v57, 0.0 }
 0x162   : > { %v2458_v63 = vpop.f32.mrf.mxu2  ;;  %v2461_v41 = vpop.f32.mrf.mxu1 }
 0x163   : > { %1918 = vmatmul.msk.bf16.gmra.mxu3 %vm690_vm2, %v1985_v6  ;;  %v2453_v61 = vpop.f32.mrf.mxu3  ;;  %2813 = vst [vmem:[#allocation18_spill] sm:$0xff] %v2458_v63  ;;  %v1370_v6 = vadd.f32 %v1369_v16, %v1243_v37  ;;  %v1496_v37 = vld [vmem:[%s2795_s3 + $0x78] sm:$0xff] }
 0x164   : > { %2812 = vst [vmem:[#allocation17_spill] sm:$0xff] %v2453_v61  ;;  %1498 = vmatpush.msrb.mxu1 %v1496_v37 }
 0x165   : > { %v961_v28 = vpop.f32.mrf.mxu0 }
 0x166   : > { %v962_v45 = vadd.f32 %v2233_v26, %v961_v28 }
 0x168   : > { %v1244_v7 = vmax.f32 %v962_v45, 0.0  ;;  %v1986_v45 = vld [vmem:[%s2195_s15 + $0x1f0] sm:$0xff] }
 0x16a   : > { %v1371_v28 = vadd.f32 %v1370_v6, %v1244_v7 }
 0x16b   : > { %v2463_v35 = vpop.f32.mrf.mxu3 }
 0x16d   : > { %v964_v39 = vpop.f32.mrf.mxu0 }
 0x16e   : > { %v965_v5 = vadd.f32 %v2233_v26, %v964_v39 }
 0x170   : > { %v1245_v52 = vmax.f32 %v965_v5, 0.0 }
 0x172   : > { %v1372_v61 = vadd.f32 %v1371_v28, %v1245_v52  ;;  %v985_v28 = vadd.f32 %v2233_v26, %v2279_v17  ;;  %v992_v17 = vadd.f32 %v2233_v26, %v2309_v43  ;;  %v1000_v43 = vadd.f32 %v2233_v26, %v2333_v2 }
 0x173   : > { %1919 = vmatmul.msk.bf16.gmra.mxu3 %vm690_vm2, %v1986_v45  ;;  %v2476_v5 = vpop.f32.mrf.mxu3 }
 0x175   : > { %v966_v48 = vpop.f32.mrf.mxu0 }
 0x176   : > { %v967_v12 = vadd.f32 %v2233_v26, %v966_v48 }
 0x178   : > { %v1246_v57 = vmax.f32 %v967_v12, 0.0  ;;  %v2478_v12 = vpop.f32.mrf.mxu1 }
 0x17a   : > { %v1373_v53 = vadd.f32 %v1372_v61, %v1246_v57 }
 0x17d   : > { %v969_v58 = vpop.f32.mrf.mxu0 }
 0x17e   : > { %v970_v21 = vadd.f32 %v2233_v26, %v969_v58 }
 0x180   : > { %v1247_v31 = vmax.f32 %v970_v21, 0.0 }
 0x182   : > { %v1374_v7 = vadd.f32 %v1373_v53, %v1247_v31  ;;  %v990_v53 = vadd.f32 %v2233_v26, %v2297_v34  ;;  %v997_v34 = vadd.f32 %v2233_v26, %v2327_v59 }
 0x185   : > { %v971_v1 = vpop.f32.mrf.mxu0 }
 0x186   : > { %v972_v39 = vadd.f32 %v2233_v26, %v971_v1  ;;  %v2474_v1 = vpop.f32.mrf.mxu2 }
 0x188   : > { %v1248_v63 = vmax.f32 %v972_v39, 0.0  ;;  %v987_v39 = vadd.f32 %v2233_v26, %v2291_v27  ;;  %v1255_v27 = vmax.f32 %v990_v53, 0.0  ;;  %v1005_v53 = vadd.f32 %v2233_v26, %v2351_v20 }
 0x189   : > { %v1010_v20 = vadd.f32 %v2233_v26, %v2376_v49 }
 0x18d   : > { %v974_v15 = vpop.f32.mrf.mxu0 }
 0x18e   : > { %v975_v9 = vadd.f32 %v2233_v26, %v974_v15  ;;  %v1375_v15 = vadd.f32 %v1374_v7, %v1248_v63  ;;  %v1253_v63 = vmax.f32 %v985_v28, 0.0  ;;  %v2489_v37 = vpop.f32.mrf.mxu2  ;;  %v1254_v7 = vmax.f32 %v987_v39, 0.0 }
 0x18f   : > { %v1258_v39 = vmax.f32 %v997_v34, 0.0 }
 0x190   : > { %v1249_v58 = vmax.f32 %v975_v9, 0.0 }
 0x195   : > { %v976_v24 = vpop.f32.mrf.mxu0 }
 0x196   : > { %v977_v16 = vadd.f32 %v2233_v26, %v976_v24  ;;  %v1376_v24 = vadd.f32 %v1375_v15, %v1249_v58  ;;  %v2494_v15 = vpop.f32.mrf.mxu1 }
 0x198   : > { %v1250_v61 = vmax.f32 %v977_v16, 0.0 }
 0x19a   : > { %v1377_v57 = vadd.f32 %v1376_v24, %v1250_v61  ;;  %v995_v61 = vadd.f32 %v2233_v26, %v2315_v50 }
 0x19c   : > { %v1257_v28 = vmax.f32 %v995_v61, 0.0 }
 0x19d   : > { %v979_v48 = vpop.f32.mrf.mxu0 }
 0x19e   : > { %v980_v52 = vadd.f32 %v2233_v26, %v979_v48  ;;  %v2485_v48 = vpop.f32.mrf.mxu3  ;;  %v1039_v2 = vpop.f32.mrf.mxu1 }
 0x1a0   : > { %v1251_v6 = vmax.f32 %v980_v52, 0.0  ;;  %v1987_v52 = vld [vmem:[%s2195_s15 + $0x1f8] sm:$0xff]  ;;  %s2054_s15 = scalar_lea.hbm %s2053_s14, 1 }
 0x1a1   : > { %1920 = vmatmul.msk.bf16.gmra.mxu3 %vm690_vm2, %v1987_v52  ;;  %v1261_v52 = vmax.f32 %v1005_v53, 0.0  ;;  %p2055_p11 = scmp.ne.s32.totalorder %s2053_s14, %s2054_s15  ;;  %p2060_p1 = scmp.lt.s32.totalorder %s2058_s17, %s2054_s15 }
 0x1a2   : > { %v1378_v9 = vadd.f32 %v1377_v57, %v1251_v6  ;;  %v1256_v6 = vmax.f32 %v992_v17, 0.0  ;;  %v1007_v17 = vadd.f32 %v2233_v26, %v2363_v33  ;;  %v1493_v33 = vld [vmem:[%s2795_s3 + $0x60] sm:$0xff] }
 0x1a3   : > { %p2056_p12 = pnand %p2055_p11, %p2171_p5  ;;  %p2061_p2 = por %p2060_p1, %p2059_p0 }
 0x1a4   : > { %v1262_v61 = vmax.f32 %v1007_v17, 0.0  ;;  %v1025_v17 = vadd.f32 %v2233_v26, %v2433_v54  ;;  %v1032_v54 = vadd.f32 %v2233_v26, %v2461_v41 }
 0x1a5   : > { %v981_v21 = vpop.f32.mrf.mxu0  ;;  %p2057_p13 = pneg %p2056_p12 }
 0x1a6   : > { %v982_v31 = vadd.f32 %v2233_v26, %v981_v21 }
 0x1a7   : > { %p2062_p3 = pnand %p2061_p2, %p2057_p13 }
 0x1a8   : > { %v1252_v45 = vmax.f32 %v982_v31, 0.0  ;;  %v2503_v31 = vpop.f32.mrf.mxu3 }
 0x1aa   : > { %v1379_v16 = vadd.f32 %v1378_v9, %v1252_v45  ;;  %v1002_v9 = vadd.f32 %v2233_v26, %v2345_v11  ;;  %v2507_v45 = vpop.f32.mrf.mxu2  ;;  %v1494_v11 = vld [vmem:[%s2795_s3 + $0x68] sm:$0xff] }
 0x1ac   : > { %v1380_v58 = vadd.f32 %v1379_v16, %v1253_v63  ;;  %v1259_v63 = vmax.f32 %v1000_v43, 0.0  ;;  %v1495_v16 = vld [vmem:[%s2795_s3 + $0x70] sm:$0xff] }
 0x1ad   : > { %1499 = vmatpush.msrb.mxu1 %v1495_v16  ;;  %v1022_v16 = vadd.f32 %v2233_v26, %v2425_v44 }
 0x1ae   : > { %v1381_v24 = vadd.f32 %v1380_v58, %v1254_v7  ;;  %v1260_v7 = vmax.f32 %v1002_v9, 0.0  ;;  %v1041_v9 = vpop.f32.mrf.mxu1 }
 0x1af   : > { %1500 = vmatpush.msrb.mxu1 %v1494_v11 }
 0x1b0   : > { %v1382_v21 = vadd.f32 %v1381_v24, %v1255_v27  ;;  %v1012_v24 = vadd.f32 %v2233_v26, %v2384_v60  ;;  %v2526_v34 = vpop.f32.mrf.mxu3 }
 0x1b1   : > { %1501 = vmatpush.msrb.mxu1 %v1493_v33 }
 0x1b2   : > { %v1383_v57 = vadd.f32 %v1382_v21, %v1256_v6  ;;  %v1263_v21 = vmax.f32 %v1010_v20, 0.0  ;;  %v1264_v49 = vmax.f32 %v1012_v24, 0.0 }
 0x1b4   : > { %v1384_v50 = vadd.f32 %v1383_v57, %v1257_v28  ;;  %v1015_v28 = vadd.f32 %v2233_v26, %v2397_v10  ;;  %v2530_v57 = vpop.f32.mrf.mxu2 }
 0x1b6   : > { %v1385_v59 = vadd.f32 %v1384_v50, %v1258_v39  ;;  %v1017_v39 = vadd.f32 %v2233_v26, %v2405_v18  ;;  %v1265_v50 = vmax.f32 %v1015_v28, 0.0  ;;  %v1268_v18 = vmax.f32 %v1022_v16, 0.0  ;;  %v1044_v24 = vpop.f32.mrf.mxu1 }
 0x1b7   : > { %v1035_v28 = vadd.f32 %v2233_v26, %v2478_v12  ;;  %v1042_v16 = vadd.f32 %v2233_v26, %v1041_v9 }
 0x1b8   : > { %v1386_v58 = vadd.f32 %v1385_v59, %v1259_v63  ;;  %v1020_v63 = vadd.f32 %v2233_v26, %v2415_v32  ;;  %v1266_v59 = vmax.f32 %v1017_v39, 0.0  ;;  %v2540_v11 = vpop.f32.mrf.mxu3  ;;  %v1269_v32 = vmax.f32 %v1025_v17, 0.0 }
 0x1b9   : > { %v1037_v39 = vadd.f32 %v2233_v26, %v2494_v15  ;;  %v1045_v17 = vadd.f32 %v2233_v26, %v1044_v24  ;;  %v1055_v24 = vadd.f32 %v2233_v26, %v2304_v40  ;;  %v1065_v40 = vadd.f32 %v2233_v26, %v2340_v8 }
 0x1ba   : > { %v1387_v27 = vadd.f32 %v1386_v58, %v1260_v7  ;;  %v1267_v10 = vmax.f32 %v1020_v63, 0.0  ;;  %v1040_v63 = vadd.f32 %v2233_v26, %v1039_v2  ;;  %v1075_v8 = vadd.f32 %v2233_v26, %v2373_v47 }
 0x1bb   : > { %v1277_v2 = vmax.f32 %v1045_v17, 0.0  ;;  %v1072_v17 = vadd.f32 %v2233_v26, %v2365_v36 }
 0x1bc   : > { %v1388_v6 = vadd.f32 %v1387_v27, %v1261_v52  ;;  %v1027_v52 = vadd.f32 %v2233_v26, %v2441_v3  ;;  %v2544_v27 = vpop.f32.mrf.mxu2  ;;  %v1272_v3 = vmax.f32 %v1032_v54, 0.0 }
 0x1be   : > { %v1389_v43 = vadd.f32 %v1388_v6, %v1262_v61  ;;  %v1030_v61 = vadd.f32 %v2233_v26, %v2450_v38  ;;  %v1270_v6 = vmax.f32 %v1027_v52, 0.0  ;;  %v1273_v38 = vmax.f32 %v1035_v28, 0.0 }
 0x1bf   : > { %v1050_v52 = vadd.f32 %v2233_v26, %v2286_v23  ;;  %v1057_v23 = vadd.f32 %v2233_v26, %v2311_v46 }
 0x1c0   : > { %v1390_v60 = vadd.f32 %v1389_v43, %v1263_v21  ;;  %v1271_v21 = vmax.f32 %v1030_v61, 0.0  ;;  %v1052_v61 = vadd.f32 %v2233_v26, %v2293_v30 }
 0x1c1   : > { %v1279_v54 = vmax.f32 %v1050_v52, 0.0  ;;  %v1282_v30 = vmax.f32 %v1057_v23, 0.0 }
 0x1c2   : > { %v1391_v53 = vadd.f32 %v1390_v60, %v1264_v49  ;;  %v2554_v60 = vpop.f32.mrf.mxu3 }
 0x1c4   : > { %v1392_v7 = vadd.f32 %v1391_v53, %v1265_v50  ;;  %v2557_v53 = vpop.f32.mrf.mxu2 }
 0x1c6   : > { %v1393_v58 = vadd.f32 %v1392_v7, %v1266_v59  ;;  %v1274_v59 = vmax.f32 %v1037_v39, 0.0  ;;  %v1046_v7 = vpop.f32.mrf.mxu1  ;;  %v1062_v39 = vadd.f32 %v2233_v26, %v2329_v62 }
 0x1c7   : > { %v1047_v15 = vadd.f32 %v2233_v26, %v1046_v7  ;;  %v1285_v7 = vmax.f32 %v1065_v40, 0.0 }
 0x1c8   : > { %v1394_v20 = vadd.f32 %v1393_v58, %v1267_v10  ;;  %v1275_v10 = vmax.f32 %v1040_v63, 0.0  ;;  %v1284_v46 = vmax.f32 %v1062_v39, 0.0 }
 0x1ca   : > { %v1395_v44 = vadd.f32 %v1394_v20, %v1268_v18  ;;  %v1276_v18 = vmax.f32 %v1042_v16, 0.0  ;;  %v1067_v16 = vadd.f32 %v2233_v26, %v2347_v14  ;;  %v1077_v14 = vadd.f32 %v2233_v26, %v2381_v55 }
 0x1cb   : > { %v1085_v55 = vadd.f32 %v2233_v26, %v2408_v22  ;;  %v1090_v22 = vadd.f32 %v2233_v26, %v2423_v42  ;;  %v1097_v42 = vadd.f32 %v2233_v26, %v2446_v19 }
 0x1cc   : > { %v1396_v33 = vadd.f32 %v1395_v44, %v1269_v32  ;;  %v2564_v32 = vpop.f32.mrf.mxu3  ;;  %v1278_v44 = vmax.f32 %v1047_v15, 0.0  ;;  %v1290_v47 = vmax.f32 %v1077_v14, 0.0 }
 0x1ce   : > { %v1397_v43 = vadd.f32 %v1396_v33, %v1270_v6  ;;  %v2568_v6 = vpop.f32.mrf.mxu2 }
 0x1d0   : > { %v1398_v49 = vadd.f32 %v1397_v43, %v1271_v21  ;;  %v1280_v21 = vmax.f32 %v1052_v61, 0.0  ;;  %v1281_v43 = vmax.f32 %v1055_v24, 0.0 }
 0x1d2   : > { %v1399_v50 = vadd.f32 %v1398_v49, %v1272_v3  ;;  %v1060_v3 = vadd.f32 %v2233_v26, %v2322_v56 }
 0x1d4   : > { %v1400_v41 = vadd.f32 %v1399_v50, %v1273_v38  ;;  %v2578_v50 = vpop.f32.mrf.mxu3  ;;  %v1283_v63 = vmax.f32 %v1060_v3, 0.0 }
 0x1d6   : > { %v1401_v12 = vadd.f32 %v1400_v41, %v1274_v59  ;;  %v2582_v59 = vpop.f32.mrf.mxu2 }
 0x1d8   : > { %v1402_v58 = vadd.f32 %v1401_v12, %v1275_v10  ;;  %v1070_v12 = vadd.f32 %v2233_v26, %v2357_v25  ;;  %v1286_v10 = vmax.f32 %v1067_v16, 0.0  ;;  %v1289_v25 = vmax.f32 %v1075_v8, 0.0 }
 0x1da   : > { %v1403_v20 = vadd.f32 %v1402_v58, %v1276_v18  ;;  %v1287_v18 = vmax.f32 %v1070_v12, 0.0 }
 0x1dc   : > { %v1404_v9 = vadd.f32 %v1403_v20, %v1277_v2  ;;  %v2592_v52 = vpop.f32.mrf.mxu3  ;;  %v1288_v20 = vmax.f32 %v1072_v17, 0.0 }
 0x1de   : > { %v1405_v33 = vadd.f32 %v1404_v9, %v1278_v44  ;;  %v2596_v61 = vpop.f32.mrf.mxu2  ;;  %v1080_v9 = vadd.f32 %v2233_v26, %v2391_v4  ;;  %v1492_v44 = vld [vmem:[%s2795_s3 + $0x58] sm:$0xff]  ;;  %v1491_v4 = vld [vmem:[%s2795_s3 + $0x50] sm:$0xff] }
 0x1df   : > { %1502 = vmatpush.msrb.mxu1 %v1492_v44  ;;  %v1110_v44 = vadd.f32 %v2233_v26, %v2530_v57 }
 0x1e0   : > { %v1406_v28 = vadd.f32 %v1405_v33, %v1279_v54  ;;  %v1082_v54 = vadd.f32 %v2233_v26, %v2399_v13  ;;  %v1291_v33 = vmax.f32 %v1080_v9, 0.0  ;;  %v1490_v13 = vld [vmem:[%s2795_s3 + $0x48] sm:$0xff] }
 0x1e1   : > { %1503 = vmatpush.msrb.mxu1 %v1491_v4 }
 0x1e2   : > { %v1407_v49 = vadd.f32 %v1406_v28, %v1280_v21  ;;  %v1292_v23 = vmax.f32 %v1082_v54, 0.0  ;;  %v1087_v28 = vadd.f32 %v2233_v26, %v2413_v29  ;;  %v1489_v29 = vld [vmem:[%s2795_s3 + $0x40] sm:$0xff] }
 0x1e3   : > { %1504 = vmatpush.msrb.mxu1 %v1490_v13  ;;  %v1120_v13 = vadd.f32 %v2233_v26, %v2582_v59 }
 0x1e4   : > { %v1408_v38 = vadd.f32 %v1407_v49, %v1281_v43  ;;  %v2615_v3 = vpop.f32.mrf.mxu3  ;;  %v1293_v49 = vmax.f32 %v1085_v55, 0.0  ;;  %v1303_v55 = vmax.f32 %v1110_v44, 0.0  ;;  %v2819_v44 = vld [vmem:[#allocation9_spill] sm:$0xff] }
 0x1e5   : > { %1505 = vmatpush.msrb.mxu1 %v1489_v29 }
 0x1e6   : > { %v1409_v41 = vadd.f32 %v1408_v38, %v1282_v30  ;;  %v1124_v39 = vpop.f32.mrf.mxu2  ;;  %v1294_v38 = vmax.f32 %v1087_v28, 0.0  ;;  %v1117_v28 = vadd.f32 %v2233_v26, %v2568_v6 }
 0x1e8   : > { %v1410_v56 = vadd.f32 %v1409_v41, %v1283_v63  ;;  %v1092_v63 = vadd.f32 %v2233_v26, %v2429_v51  ;;  %v1295_v41 = vmax.f32 %v1090_v22, 0.0  ;;  %v1488_v51 = vld [vmem:[%s2795_s3 + $0x38] sm:$0xff]  ;;  %v1122_v22 = vadd.f32 %v2233_v26, %v2596_v61  ;;  %v2815_v61 = vld [vmem:[#allocation5_spill] sm:$0xff] }
 0x1e9   : > { %1506 = vmatpush.msrb.mxu1 %v1488_v51  ;;  %v1135_v51 = vadd.f32 %v2233_v26, %v2815_v61 }
 0x1ea   : > { %v1411_v62 = vadd.f32 %v1410_v56, %v1284_v46  ;;  %v1095_v46 = vadd.f32 %v2233_v26, %v2439_v0  ;;  %v1296_v56 = vmax.f32 %v1092_v63, 0.0  ;;  %v1102_v0 = vadd.f32 %v2233_v26, %v2474_v1 }
 0x1eb   : > { %v1112_v1 = vadd.f32 %v2233_v26, %v2544_v27  ;;  %v1308_v29 = vmax.f32 %v1122_v22, 0.0  ;;  %v2823_v22 = vld [vmem:[#allocation13_spill] sm:$0xff] }
 0x1ec   : > { %v1412_v58 = vadd.f32 %v1411_v62, %v1285_v7  ;;  %v1297_v12 = vmax.f32 %v1095_v46, 0.0  ;;  %v2814_v62 = vld [vmem:[#allocation18_spill] sm:$0xff] }
 0x1ee   : > { %v1413_v15 = vadd.f32 %v1412_v58, %v1286_v10  ;;  %v1100_v10 = vadd.f32 %v2233_v26, %v2814_v62  ;;  %v2633_v58 = vpop.f32.mrf.mxu3  ;;  %v2666_v62 = vld [vmem:[%s2794_s2] ss:$0 sm:$0xff] }
 0x1f0   : > { %v1414_v2 = vadd.f32 %v1413_v15, %v1287_v18  ;;  %v1298_v18 = vmax.f32 %v1097_v42, 0.0  ;;  %v1126_v15 = vpop.f32.mrf.mxu2  ;;  %v1299_v19 = vmax.f32 %v1100_v10, 0.0  ;;  %v2816_v10 = vld [vmem:[#allocation6_spill] sm:$0xff] }
 0x1f1   : > { %v1127_v6 = vadd.f32 %v2233_v26, %v1126_v15  ;;  %v1313_v15 = vmax.f32 %v1135_v51, 0.0 }
 0x1f2   : > { %v1415_v36 = vadd.f32 %v1414_v2, %v1288_v20  ;;  %v1105_v20 = vadd.f32 %v2233_v26, %v2489_v37  ;;  %v1300_v2 = vmax.f32 %v1102_v0, 0.0 }
 0x1f3   : > { %v1310_v42 = vmax.f32 %v1127_v6, 0.0 }
 0x1f4   : > { %v1416_v24 = vadd.f32 %v1415_v36, %v1289_v25  ;;  %v1107_v25 = vadd.f32 %v2233_v26, %v2507_v45  ;;  %v1301_v36 = vmax.f32 %v1105_v20, 0.0  ;;  %v1304_v45 = vmax.f32 %v1112_v1, 0.0 }
 0x1f6   : > { %v1417_v21 = vadd.f32 %v1416_v24, %v1290_v47  ;;  %v1302_v54 = vmax.f32 %v1107_v25, 0.0 }
 0x1f8   : > { %v1418_v43 = vadd.f32 %v1417_v21, %v1291_v33  ;;  %v2645_v33 = vpop.f32.mrf.mxu3  ;;  %v1115_v21 = vadd.f32 %v2233_v26, %v2557_v53  ;;  %v1129_v4 = vpop.f32.mrf.mxu2  ;;  %v1125_v53 = vadd.f32 %v2233_v26, %v1124_v39 }
 0x1f9   : > { %v1130_v59 = vadd.f32 %v2233_v26, %v1129_v4  ;;  %v2821_v4 = vld [vmem:[#allocation11_spill] sm:$0xff] }
 0x1fa   : > { %v1419_v30 = vadd.f32 %v1418_v43, %v1292_v23  ;;  %v1305_v43 = vmax.f32 %v1115_v21, 0.0 }
 0x1fb   : > { %v1311_v39 = vmax.f32 %v1130_v59, 0.0 }
 0x1fc   : > { %v1420_v40 = vadd.f32 %v1419_v30, %v1293_v49  ;;  %v1306_v49 = vmax.f32 %v1117_v28, 0.0 }
 0x1fe   : > { %v1421_v16 = vadd.f32 %v1420_v40, %v1294_v38  ;;  %v1307_v38 = vmax.f32 %v1120_v13, 0.0 }
 0x200   : > { %v1422_v7 = vadd.f32 %v1421_v16, %v1295_v41  ;;  %v2656_v63 = vpop.f32.mrf.mxu3  ;;  %v1131_v41 = vpop.f32.mrf.mxu2  ;;  %v1309_v16 = vmax.f32 %v1125_v53, 0.0 }
 0x202   : > { %v1423_v17 = vadd.f32 %v1422_v7, %v1296_v56  ;;  %v1132_v7 = vadd.f32 %v2233_v26, %v1131_v41 }
 0x204   : > { %v1424_v8 = vadd.f32 %v1423_v17, %v1297_v12  ;;  %v1137_v17 = vadd.f32 %v2666_v62, %v2816_v10  ;;  %v1312_v0 = vmax.f32 %v1132_v7, 0.0 }
 0x206   : > { %v1425_v14 = vadd.f32 %v1424_v8, %v1298_v18  ;;  %v1314_v26 = vmax.f32 %v1137_v17, 0.0 }
 0x208   : > { %v1426_v9 = vadd.f32 %v1425_v14, %v1299_v19  ;;  %v2670_v8 = vpop.f32.mrf.mxu3  ;;  %v2817_v19 = vld [vmem:[#allocation7_spill] sm:$0xff] }
 0x209   : > { %v1140_v20 = vadd.f32 %v2666_v62, %v2817_v19 }
 0x20a   : > { %v1427_v47 = vadd.f32 %v1426_v9, %v1300_v2  ;;  %v2818_v2 = vld [vmem:[#allocation8_spill] sm:$0xff] }
 0x20b   : > { %v1142_v25 = vadd.f32 %v2666_v62, %v2818_v2 }
 0x20c   : > { %v1428_v24 = vadd.f32 %v1427_v47, %v1301_v36  ;;  %v1315_v36 = vmax.f32 %v1140_v20, 0.0  ;;  %v1145_v47 = vadd.f32 %v2666_v62, %v2819_v44  ;;  %v1486_v20 = vld [vmem:[%s2795_s3 + $0x28] sm:$0xff] }
 0x20d   : > { %v1316_v1 = vmax.f32 %v1142_v25, 0.0 }
 0x20e   : > { %v1429_v37 = vadd.f32 %v1428_v24, %v1302_v54  ;;  %v2820_v24 = vld [vmem:[#allocation10_spill] sm:$0xff]  ;;  %v1317_v21 = vmax.f32 %v1145_v47, 0.0  ;;  %v1175_v47 = vadd.f32 %v2666_v62, %v2503_v31 }
 0x20f   : > { %v1483_v31 = vld [vmem:[%s2795_s3 + $0x10] sm:$0xff] }
 0x210   : > { %v1430_v23 = vadd.f32 %v1429_v37, %v1303_v55  ;;  %v1147_v55 = vadd.f32 %v2666_v62, %v2820_v24  ;;  %v2682_v28 = vpop.f32.mrf.mxu3 }
 0x212   : > { %v1431_v57 = vadd.f32 %v1430_v23, %v1304_v45  ;;  %v1150_v45 = vadd.f32 %v2666_v62, %v2821_v4 }
 0x214   : > { %v1432_v27 = vadd.f32 %v1431_v57, %v1305_v43  ;;  %v1318_v57 = vmax.f32 %v1147_v55, 0.0  ;;  %v2822_v43 = vld [vmem:[#allocation12_spill] sm:$0xff] }
 0x215   : > { %v1152_v13 = vadd.f32 %v2666_v62, %v2822_v43  ;;  %v1185_v43 = vadd.f32 %v2666_v62, %v2564_v32  ;;  %v1195_v32 = vadd.f32 %v2666_v62, %v2633_v58  ;;  %v1200_v58 = vadd.f32 %v2666_v62, %v2656_v63 }
 0x216   : > { %v1433_v30 = vadd.f32 %v1432_v27, %v1306_v49  ;;  %v1319_v49 = vmax.f32 %v1150_v45, 0.0 }
 0x217   : > { %v1320_v53 = vmax.f32 %v1152_v13, 0.0 }
 0x218   : > { %v1434_v40 = vadd.f32 %v1433_v30, %v1307_v38  ;;  %v1155_v30 = vadd.f32 %v2666_v62, %v2823_v22  ;;  %v2694_v51 = vpop.f32.mrf.mxu3 }
 0x21a   : > { %v1435_v46 = vadd.f32 %v1434_v40, %v1308_v29  ;;  %v2824_v40 = vld [vmem:[#allocation14_spill] sm:$0xff]  ;;  %v1321_v41 = vmax.f32 %v1155_v30, 0.0  ;;  %v1333_v30 = vmax.f32 %v1185_v43, 0.0 }
 0x21b   : > { %v1157_v29 = vadd.f32 %v2666_v62, %v2824_v40 }
 0x21c   : > { %v1436_v56 = vadd.f32 %v1435_v46, %v1309_v16  ;;  %v2825_v46 = vld [vmem:[#allocation15_spill] sm:$0xff] }
 0x21d   : > { %v1160_v16 = vadd.f32 %v2666_v62, %v2825_v46 }
 0x21e   : > { %v1437_v12 = vadd.f32 %v1436_v56, %v1310_v42  ;;  %v1322_v56 = vmax.f32 %v1157_v29, 0.0  ;;  %v2826_v42 = vld [vmem:[#allocation16_spill] sm:$0xff] }
 0x21f   : > { %v1162_v7 = vadd.f32 %v2666_v62, %v2826_v42 }
 0x220   : > { %v1438_v18 = vadd.f32 %v1437_v12, %v1311_v39  ;;  %v1323_v12 = vmax.f32 %v1160_v16, 0.0  ;;  %v2827_v39 = vld [vmem:[#allocation17_spill] sm:$0xff] }
 0x221   : > { %v1165_v10 = vadd.f32 %v2666_v62, %v2827_v39  ;;  %v1339_v39 = vmax.f32 %v1200_v58, 0.0 }
 0x222   : > { %v1439_v14 = vadd.f32 %v1438_v18, %v1312_v0  ;;  %v1487_v18 = vld [vmem:[%s2795_s3 + $0x30] sm:$0xff]  ;;  %v1324_v0 = vmax.f32 %v1162_v7, 0.0 }
 0x223   : > { %1507 = vmatpush.msrb.mxu1 %v1487_v18 }
 0x224   : > { %v1440_v9 = vadd.f32 %v1439_v14, %v1313_v15  ;;  %v1167_v15 = vadd.f32 %v2666_v62, %v2463_v35  ;;  %v1325_v14 = vmax.f32 %v1165_v10, 0.0  ;;  %v1485_v35 = vld [vmem:[%s2795_s3 + $0x20] sm:$0xff]  ;;  %v1205_v10 = vadd.f32 %v2666_v62, %v2682_v28 }
 0x225   : > { %1508 = vmatpush.msrb.mxu1 %v1486_v20 }
 0x226   : > { %v1441_v54 = vadd.f32 %v1440_v9, %v1314_v26  ;;  %v1170_v26 = vadd.f32 %v2666_v62, %v2476_v5  ;;  %v1326_v25 = vmax.f32 %v1167_v15, 0.0  ;;  %v1172_v9 = vadd.f32 %v2666_v62, %v2485_v48  ;;  %v1484_v48 = vld [vmem:[%s2795_s3 + $0x18] sm:$0xff] }
 0x227   : > { %1509 = vmatpush.msrb.mxu1 %v1485_v35  ;;  %v1177_v5 = vadd.f32 %v2666_v62, %v2526_v34  ;;  %v1182_v34 = vadd.f32 %v2666_v62, %v2554_v60  ;;  %v1192_v60 = vadd.f32 %v2666_v62, %v2615_v3  ;;  %v1337_v3 = vmax.f32 %v1195_v32, 0.0 }
 0x228   : > { %v1442_v37 = vadd.f32 %v1441_v54, %v1315_v36  ;;  %v1327_v44 = vmax.f32 %v1170_v26, 0.0  ;;  %v1328_v24 = vmax.f32 %v1172_v9, 0.0 }
 0x229   : > { %1510 = vmatpush.msrb.mxu1 %v1484_v48  ;;  %v1330_v45 = vmax.f32 %v1177_v5, 0.0  ;;  %v1336_v46 = vmax.f32 %v1192_v60, 0.0 }
 0x22a   : > { %v1443_v23 = vadd.f32 %v1442_v37, %v1316_v1  ;;  %v1209_v1 = vpop.f32.mrf.mxu3  ;;  %v1329_v37 = vmax.f32 %v1175_v47, 0.0 }
 0x22b   : > { %1511 = vmatpush.msrb.mxu1 %v1483_v31  ;;  %v1210_v63 = vadd.f32 %v2666_v62, %v1209_v1 }
 0x22c   : > { %v1444_v27 = vadd.f32 %v1443_v23, %v1317_v21  ;;  %v1180_v21 = vadd.f32 %v2666_v62, %v2540_v11  ;;  %v1187_v11 = vadd.f32 %v2666_v62, %v2578_v50  ;;  %v1197_v50 = vadd.f32 %v2666_v62, %v2645_v33 }
 0x22d   : > { %v1202_v33 = vadd.f32 %v2666_v62, %v2670_v8 }
 0x22e   : > { %v1445_v38 = vadd.f32 %v1444_v27, %v1318_v57  ;;  %v1331_v57 = vmax.f32 %v1180_v21, 0.0  ;;  %v1332_v27 = vmax.f32 %v1182_v34, 0.0  ;;  %v1334_v40 = vmax.f32 %v1187_v11, 0.0 }
 0x22f   : > { %v1338_v7 = vmax.f32 %v1197_v50, 0.0  ;;  %v1340_v18 = vmax.f32 %v1202_v33, 0.0 }
 0x230   : > { %v1446_v6 = vadd.f32 %v1445_v38, %v1319_v49  ;;  %v1190_v38 = vadd.f32 %v2666_v62, %v2592_v52  ;;  %v1482_v52 = vld [vmem:[%s2795_s3 + $0x8] sm:$0xff] }
 0x231   : > { %1512 = vmatpush.msrb.mxu1 %v1482_v52 }
 0x232   : > { %v1447_v59 = vadd.f32 %v1446_v6, %v1320_v53  ;;  %v1211_v22 = vpop.f32.mrf.mxu3  ;;  %v1335_v6 = vmax.f32 %v1190_v38, 0.0 }
 0x233   : > { %v1212_v26 = vadd.f32 %v2666_v62, %v1211_v22 }
 0x234   : > { %v1448_v61 = vadd.f32 %v1447_v59, %v1321_v41  ;;  %v1481_v59 = vld [vmem:[%s2795_s3] sm:$0xff] }
 0x235   : > { %1513 = vmatpush.msrb.mxu1 %v1481_v59  ;;  %v1344_v28 = vmax.f32 %v1212_v26, 0.0 }
 0x236   : > { %v1449_v17 = vadd.f32 %v1448_v61, %v1322_v56 }
 0x238   : > { %v1450_v19 = vadd.f32 %v1449_v17, %v1323_v12 }
 0x23a   : > { %v1451_v2 = vadd.f32 %v1450_v19, %v1324_v0  ;;  %v1214_v42 = vpop.f32.mrf.mxu3  ;;  %v1207_v0 = vadd.f32 %v2666_v62, %v2694_v51  ;;  %v1341_v19 = vmax.f32 %v1205_v10, 0.0 }
 0x23b   : > { %v1215_v9 = vadd.f32 %v2666_v62, %v1214_v42 }
 0x23c   : > { %v1452_v36 = vadd.f32 %v1451_v2, %v1325_v14  ;;  %v1342_v14 = vmax.f32 %v1207_v0, 0.0 }
 0x23e   : > { %v1453_v54 = vadd.f32 %v1452_v36, %v1326_v25  ;;  %v1343_v25 = vmax.f32 %v1210_v63, 0.0 }
 0x240   : > { %v1454_v55 = vadd.f32 %v1453_v54, %v1327_v44  ;;  %v1345_v44 = vmax.f32 %v1215_v9, 0.0 }
 0x242   : > { %v1455_v4 = vadd.f32 %v1454_v55, %v1328_v24  ;;  %v1216_v2 = vpop.f32.mrf.mxu3 }
 0x243   : > { %v1217_v35 = vadd.f32 %v2666_v62, %v1216_v2  ;;  %v1497_v62 = vld [vmem:[%s2796_s4] sm:$0x1] }
 0x244   : > { %v1456_v23 = vadd.f32 %v1455_v4, %v1329_v37 }
 0x245   : > { %v1346_v54 = vmax.f32 %v1217_v35, 0.0 }
 0x246   : > { %v1457_v13 = vadd.f32 %v1456_v23, %v1330_v45 }
 0x248   : > { %v1458_v49 = vadd.f32 %v1457_v13, %v1331_v57 }
 0x24a   : > { %v1459_v53 = vadd.f32 %v1458_v49, %v1332_v27 }
 0x24c   : > { %v1460_v29 = vadd.f32 %v1459_v53, %v1333_v30 }
 0x24e   : > { %v1461_v41 = vadd.f32 %v1460_v29, %v1334_v40 }
 0x250   : > { %v1462_v16 = vadd.f32 %v1461_v41, %v1335_v6 }
 0x252   : > { %v1463_v56 = vadd.f32 %v1462_v16, %v1336_v46 }
 0x254   : > { %v1464_v61 = vadd.f32 %v1463_v56, %v1337_v3 }
 0x256   : > { %v1465_v12 = vadd.f32 %v1464_v61, %v1338_v7 }
 0x258   : > { %v1466_v17 = vadd.f32 %v1465_v12, %v1339_v39 }
 0x25a   : > { %v1467_v15 = vadd.f32 %v1466_v17, %v1340_v18 }
 0x25c   : > { %v1468_v20 = vadd.f32 %v1467_v15, %v1341_v19 }
 0x25e   : > { %v1469_v8 = vadd.f32 %v1468_v20, %v1342_v14 }
 0x260   : > { %v1470_v36 = vadd.f32 %v1469_v8, %v1343_v25 }
 0x262   : > { %v1471_v51 = vadd.f32 %v1470_v36, %v1344_v28 }
 0x264   : > { %v1472_v47 = vadd.f32 %v1471_v51, %v1345_v44 }
 0x266   : > { %v1473_v1 = vadd.f32 %v1472_v47, %v1346_v54 }
 0x268   : > { %v1474_v24 = vrot.slane %v1473_v1, 4 }
 0x26a   : > { %v1475_v5 = vadd.f32 %v1474_v24, %v1473_v1 }
 0x26c   : > { %v1476_v55 = vrot.slane %v1475_v5, 2 }
 0x26e   : > { %v1477_v48 = vadd.f32 %v1476_v55, %v1475_v5 }
 0x270   : > { %v1478_v37 = vrot.slane %v1477_v48, 1 }
 0x272   : > { %v1479_v21 = vadd.f32 %v1478_v37, %v1477_v48 }
 0x274   : > { %v1480_v4 = vmul.f32 0.0009765625, %v1479_v21 }
 0x276   : > { %1514 = vmatmul.f32.vlgmr.msrb.gmra.mxu1 %v1480_v4 }
 0x2f3   : > { %v1515_v31 = vpop.f32.mrf.mxu1 }
 0x2f4   : > { %v1516_v45 = vadd.f32 %v1515_v31, %v1497_v62 }
 0x2f6   : > { %1518 = vst [vmem:[%s216_s10] sm:$0x1] %v1516_v45 }
 0x2f7   : > { %2065 = shalt.err (!%p2062_p3)
}
 0x2f8   : > { %1996 = dma.vmem_to_hbm [thread:$0]  (%p2171_p5), %s1531_s11, 16, %s1533_s12, %s1520_s13  }
 0x2f9 PF: > { %p2002_p4 = scmp.ge.s32.totalorder %s2100_s21, 2  ;;  %s1544_s26 = sand.u32 1, %s2088_s18  }
 0x2fa   : > { %s1545_s30 = scalar_lea.sflag [#allocation3], %s1544_s26 }
 0x2fb   : > { %p1999_p7 = pnand %p2002_p4, %p2175_p6 }
 0x2fd   : > { %p2000_p8 = pneg %p1999_p7 }
 0x2ff   : > { %2083 = dma.done.wait (%p2000_p8), %s1545_s30, 16  }
 0x300   : > { %2085 = vsyncadd (%p2000_p8), %s1545_s30, 4294967280  ;;  %p15_p9 = scmp.ge.s32.totalorder %s2158_s24, 4   ;;  %s2828_s18 = smov %s2092_s19 }
 0x301   : > { %s2829_s19 = smov %s2096_s20  ;;  %s2830_s20 = smov %s2169_s27 }
 0x302   : > { %s2831_s21 = smov %s2158_s24  ;;  %17 = sbr.rel (!%p15_p9) target bundleno = 3 (0x3), region = 75 }
 0x307   :  { %1550 = vsyncpa [#allocation3], 1 }
 0x308   :  { %1552 = vsyncpa [#allocation3 + $0x1], 1 }

</bundles_post_ra>
